<compile_context>
chip_gen: v5e
topology: v5e:2x2
jax: 0.10.0
libtpu: 0.0.40
codegen_flags: <defaults>
</compile_context>

<pallas_src>
import numpy as np
import jax
import jax.numpy as jnp
from jax.experimental import pallas as pl
from jax.experimental.pallas import tpu as pltpu


def _pos_enc_kernel(t_ref, f_ref, o_ref):
    # t_ref: (block_b, 1) f32, f_ref: (1, half) f32, o_ref: (block_b, 2*half).
    half = f_ref.shape[1]
    x = t_ref[...] * f_ref[...]              # (block_b,1)*(1,half) -> (block_b,half) [VPU]
    if half % 128 == 0:
        # Both halves are lane-aligned: two unmasked stores, no extra VMEM copy.
        o_ref[:, :half] = jnp.cos(x).astype(o_ref.dtype)
        o_ref[:, half:] = jnp.sin(x).astype(o_ref.dtype)
    else:
        # Build the full row once -> a single store (unmasked when dim%128==0),
        # instead of two masked, lane-shifted stores per step.
        row = jnp.concatenate([jnp.cos(x), jnp.sin(x)], axis=-1)
        o_ref[...] = row.astype(o_ref.dtype)


def _pick_block_b(B: int, dim: int, itemsize: int,
                  vmem_budget_bytes: int = 12 * 1024 * 1024) -> int:
    """Rows per grid step, sized by bytes (not a hard row cap).

    Per-step VMEM budget (double-buffered):
      2 * block_b * dim * itemsize   output tiles
      2 * block_b * 512              timestep tiles: (block_b,1) f32 pads to (8,128)
      2 * block_b * dim * 4          f32 cos/sin temporaries (worst case)
    """
    sublane = 16 if itemsize < 4 else 8       # bf16 packs 16 sublanes / vreg
    if B <= 2 * sublane:
        return B
    bytes_per_row = 2 * dim * itemsize + 2 * 512 + 2 * dim * 4
    tb = vmem_budget_bytes // max(bytes_per_row, 1)
    # Output-tile size beyond ~4 MiB shows no further HBM-roofline gain.
    tb = min(tb, max(sublane, (4 * 1024 * 1024) // max(dim * itemsize, 1)))
    # Guarantee >= 2 grid steps: v7x megacore uses both TCs, and writeback of
    # tile i-1 overlaps compute of tile i.
    tb = min(tb, max(sublane, pl.cdiv(B, 2)))
    tb = min(tb, B)
    return max(sublane, (tb // sublane) * sublane)


def positional_encoding(t: jax.Array, freqs: jax.Array, *,
                        block_b: int | None = None,
                        out_dtype=jnp.float32) -> jax.Array:
    """t: (B,) float, freqs: (dim//2,) float -> (B, dim) out_dtype."""
    B = int(t.shape[0])
    half = int(freqs.shape[0])
    dim = 2 * half
    itemsize = jnp.dtype(out_dtype).itemsize

    t2 = t.reshape(B, 1).astype(jnp.float32)
    f2 = freqs.reshape(1, half).astype(jnp.float32)

    if block_b is None:
        block_b = _pick_block_b(B, dim, itemsize)
    block_b = min(block_b, B)

    grid = (pl.cdiv(B, block_b),)

    # Explicit scoped-VMEM limit with headroom (v5e default is only 16 MiB).
    half_pad = ((half + 127) // 128) * 128
    est_bytes = (2 * block_b * dim * itemsize        # output tiles (double-buffered)
                 + 2 * block_b * 512                 # (block_b,1) t tiles, lane-padded
                 + 4 * block_b * dim * 4             # f32 temporaries (cos/sin/concat)
                 + 2 * 8 * half_pad * 4)             # resident freqs block
    vmem_limit = int(min(64 * 1024 * 1024, max(16 * 1024 * 1024, est_bytes * 3 // 2)))

    return pl.pallas_call(
        _pos_enc_kernel,
        out_shape=jax.ShapeDtypeStruct((B, dim), out_dtype),
        grid=grid,
        in_specs=[
            pl.BlockSpec((block_b, 1), lambda i: (i, 0)),   # timesteps: tiled over B
            pl.BlockSpec((1, half), lambda i: (0, 0)),      # freqs: constant block -> resident
        ],
        out_specs=pl.BlockSpec((block_b, dim), lambda i: (i, 0)),
        compiler_params=pltpu.CompilerParams(
            dimension_semantics=("parallel",),              # shard B across TCs (v7x megacore)
            vmem_limit_bytes=vmem_limit,
        ),
    )(t2, f2)


def make_freqs(dim: int, max_period: int = 10000) -> jax.Array:
    # Mirrors the PyTorch buffer: pow(max_period, -arange(dim//2)/(dim//2)) in f64, cast to f32.
    half = dim // 2
    freqs64 = np.power(float(max_period), -np.arange(0, half, dtype=np.float64) / half)
    return jnp.asarray(freqs64.astype(np.float32))


def _reference(t: jax.Array, freqs: jax.Array) -> jax.Array:
    x = t[:, None].astype(jnp.float32) * freqs[None, :].astype(jnp.float32)
    return jnp.concatenate([jnp.cos(x), jnp.sin(x)], axis=-1)


if __name__ == "__main__":
    key = jax.random.PRNGKey(0)
    k1, k2, k3 = jax.random.split(key, 3)

    # 1) Small shapes consistent with the module (diffusion timestep embedding).
    #    half=16 (not a 128-multiple) exercises the single-store concat path.
    dim, B = 32, 8
    t = jax.random.uniform(k1, (B,), dtype=jnp.float32, minval=0.0, maxval=1000.0)
    freqs = make_freqs(dim)
    out = jax.block_until_ready(positional_encoding(t, freqs))
    ref = _reference(t, freqs)
    assert out.shape == (B, dim), out.shape
    # f32 sin/cos with |x| up to ~1e3: allow a little slack for argument reduction.
    assert jnp.allclose(out, ref, atol=1e-4, rtol=1e-5), "mismatch vs reference (small)"

    # 2) Lane-aligned, multi-step path: half % 128 == 0 and auto-sized tiles
    #    (grid is guaranteed >= 2 steps so both v7x TCs would be used).
    dim2, B2 = 256, 1024
    t_big = jax.random.uniform(k2, (B2,), dtype=jnp.float32, minval=0.0, maxval=1000.0)
    freqs_big = make_freqs(dim2)
    out_big = jax.block_until_ready(positional_encoding(t_big, freqs_big))
    ref_big = _reference(t_big, freqs_big)
    assert out_big.shape == (B2, dim2), out_big.shape
    assert jnp.allclose(out_big, ref_big, atol=1e-4, rtol=1e-5), "mismatch vs reference (tiled)"

    # 3) Ragged final tile + bf16 output path (math in f32, cast at store only).
    dim3, B3 = 128, 100
    t_r = jax.random.uniform(k3, (B3,), dtype=jnp.float32, minval=0.0, maxval=1000.0)
    freqs_r = make_freqs(dim3)
    out_bf16 = jax.block_until_ready(
        positional_encoding(t_r, freqs_r, block_b=32, out_dtype=jnp.bfloat16))
    ref_r = _reference(t_r, freqs_r)
    assert out_bf16.shape == (B3, dim3), out_bf16.shape
    assert jnp.allclose(out_bf16.astype(jnp.float32), ref_r, atol=1e-2, rtol=1e-2), \
        "mismatch vs reference (bf16 / ragged)"

    print("KERNEL_OK")
</pallas_src>

<mosaic_0001>
module attributes {stable_mosaic.version = 11 : i64} {
  func.func @_pos_enc_kernel(%arg0: i32, %arg1: memref<8x1xf32, #tpu.memory_space<vmem>>, %arg2: memref<1x16xf32, #tpu.memory_space<vmem>>, %arg3: memref<8x32xf32, #tpu.memory_space<vmem>>) attributes {dimension_semantics = [#tpu.dimension_semantics<parallel>], iteration_bounds = array<i64: 1>, scalar_prefetch = 0 : i64, scratch_operands = 0 : i64, tpu.core_type = #tpu.core_type<tc>, window_params = [{transform_indices = @transform_0, window_bounds = array<i64: 8, 1>}, {pipeline_mode = #tpu.pipeline_mode<synchronous>, transform_indices = @transform_1, window_bounds = array<i64: 1, 16>}, {transform_indices = @transform_2, window_bounds = array<i64: 8, 32>}]} {
    %c0 = arith.constant 0 : index
    %c0_0 = arith.constant 0 : index
    %0 = vector.load %arg1[%c0, %c0_0] : memref<8x1xf32, #tpu.memory_space<vmem>>, vector<8x1xf32>
    %c0_1 = arith.constant 0 : index
    %c0_2 = arith.constant 0 : index
    %1 = vector.load %arg2[%c0_1, %c0_2] : memref<1x16xf32, #tpu.memory_space<vmem>>, vector<1x16xf32>
    %2 = vector.broadcast %0 : vector<8x1xf32> to vector<8x16xf32>
    %3 = vector.broadcast %1 : vector<1x16xf32> to vector<8x16xf32>
    %4 = arith.mulf %2, %3 : vector<8x16xf32>
    %5 = math.cos %4 : vector<8x16xf32>
    %6 = math.sin %4 : vector<8x16xf32>
    %7 = tpu.concatenate %5, %6 in 1 : vector<8x16xf32>, vector<8x16xf32> -> vector<8x32xf32>
    %c0_3 = arith.constant 0 : index
    %c0_4 = arith.constant 0 : index
    %8 = vector.load %arg3[%c0_3, %c0_4] : memref<8x32xf32, #tpu.memory_space<vmem>>, vector<8x32xf32>
    tpu.vector_store %arg3[%c0_3, %c0_4], %7 {strides = array<i32>} : memref<8x32xf32, #tpu.memory_space<vmem>>, vector<8x32xf32>,
    return
  }
  func.func @transform_0(%arg0: i32) -> (i32, i32) {
    %c0_i32 = arith.constant 0 : i32
    %c0_i32_0 = arith.constant 0 : i32
    return %arg0, %c0_i32 : i32, i32
  }
  func.func @transform_1(%arg0: i32) -> (i32, i32) {
    %c0_i32 = arith.constant 0 : i32
    %c0_i32_0 = arith.constant 0 : i32
    %c0_i32_1 = arith.constant 0 : i32
    return %c0_i32, %c0_i32_0 : i32, i32
  }
  func.func @transform_2(%arg0: i32) -> (i32, i32) {
    %c0_i32 = arith.constant 0 : i32
    %c0_i32_0 = arith.constant 0 : i32
    return %arg0, %c0_i32 : i32, i32
  }
}

</mosaic_0001>

<bundles_post_ra>
// kernel: tpu_custom_call.1
= control target key start
LH: loop header
LB: loop body
LE: loop exit
PB: predicated region body
PF: predicated region fallthrough
CT: control target
= control target key end

     0   :  { %v399_v1 = vmov 0   ;;  %s493_s0 = inlined_call_operand.vmem [shape: f32[8,1], index: 0, kind: input, shape index: {}]   ;;  %s494_s1 = inlined_call_operand.vmem [shape: f32[1,16], index: 1, kind: input, shape index: {}]   ;;  %s495_s2 = inlined_call_operand.hbm [shape: f32[8,32], index: 2, kind: output, shape index: {}]  }
   0x1   :  { %v12_v0 = vld [vmem:[%s493_s0] sm:$0xff]  ;;  %371 = vset.pattern.permute.xlu0 %v399_v1 }
   0x2   :  { %16 = vperm.xlu0 %371, %v12_v0  }
   0x3   :  { %7 = vsyncpa [#allocation3], 0  ;;  %v372_v2 = vld [vmem:[%s494_s1] ss:$0 sm:$0xff]  ;;  %v400_v16 = vmov 683565275  }
   0x4   :  { %v401_v18 = vmov 2475754826   ;;  %v402_v21 = vmov 2131351028   ;;  %v403_v24 = vmov 2102212464  }
   0x5   :  { %v404_v27 = vmov 920167782   ;;  %v405_v30 = vmov 1326507024   ;;  %s406_s0 = smov 16   ;;  %s407_s1 = smov [#allocation2]  }
   0x6   :  { %s345_s13 = sshll.u32 %s407_s1, 4  ;;  %s347_s16 = sshll.u32 %s495_s2, 4  ;;  %s346_s13 = int_to_ptr.vmem [resolvable:$true] %s345_s13  ;;  %s348_s16 = int_to_ptr.hbm [resolvable:$true] %s347_s16 }
  0x74   :  { %v17_v3 = vpop.permute.xlu0 %16 }
  0x75   :  { %v430_v4 = vmul.f32 %v372_v2, %v17_v3 }
  0x77   :  { %v26_v5 = vand.u32 2139095040, %v430_v4  ;;  %v23_v8 = vand.u32 2147483647, %v430_v4  ;;  %vm25_vm12 = vcmp.lt.s32.totalorder %v430_v4, 0 }
  0x79   :  { %v27_v6 = vshrl.u32 %v26_v5, 23  ;;  %v30_v10 = vand.u32 8388607, %v23_v8  ;;  %vm24_vm13 = vcmp.le.f32.partialorder %v23_v8, 0.7853982 }
  0x7b   :  { %v356_v7 = vadd.s32 4294967169, %v27_v6  ;;  %v31_v14 = vor.u32 8388608, %v30_v10 }
  0x7d   :  { %v33_v9 = vadd.s32 1, %v356_v7  ;;  %v447_v37 = vshll.u32 %v31_v14, 8 }
  0x7f   :  { %vm34_vm0 = vcmp.gt.s32.totalorder %v33_v9, 0  ;;  %v72_v46 = vand.u32 65535, %v447_v37  ;;  %v73_v51 = vshrl.u32 %v447_v37, 16 }
  0x80   :  { %v35_v11 = vsel %vm34_vm0, %v33_v9, 0 }
  0x81   :  { %v37_v12 = vand.u32 31, %v35_v11  ;;  %v438_v15 = vshrl.u32 %v35_v11, 5 }
  0x83   :  { %v436_v13 = vsub.s32 32, %v37_v12  ;;  %v40_v17 = vshll.u32 %v400_v16, %v37_v12  ;;  %v43_v19 = vshll.u32 %v401_v18, %v37_v12  ;;  %v46_v23 = vshll.u32 %v402_v21, %v37_v12 }
  0x84   :  { %v49_v26 = vshll.u32 %v403_v24, %v37_v12  ;;  %v52_v29 = vshll.u32 %v404_v27, %v37_v12  ;;  %vm55_vm1 = vcmp.lt.s32.totalorder %v438_v15, 1  ;;  %vm58_vm2 = vcmp.lt.s32.totalorder %v438_v15, 4 }
  0x85   :  { %v41_v20 = vshrl.u32 %v401_v18, %v436_v13  ;;  %v44_v22 = vshrl.u32 %v402_v21, %v436_v13  ;;  %v47_v25 = vshrl.u32 %v403_v24, %v436_v13  ;;  %v50_v28 = vshrl.u32 %v404_v27, %v436_v13 }
  0x86   :  { %v53_v31 = vshrl.u32 %v405_v30, %v436_v13  ;;  %vm57_vm3 = vcmp.lt.s32.totalorder %v438_v15, 3  ;;  %vm56_vm4 = vcmp.lt.s32.totalorder %v438_v15, 2  ;;  %v39_v10 = vshrl.u32 %v400_v16, %v436_v13 }
  0x87   :  { %v42_v32 = vor.u32 %v41_v20, %v40_v17  ;;  %v45_v33 = vor.u32 %v44_v22, %v43_v19  ;;  %v48_v34 = vor.u32 %v47_v25, %v46_v23  ;;  %v51_v35 = vor.u32 %v50_v28, %v49_v26 }
  0x88   :  { %v54_v36 = vor.u32 %v53_v31, %v52_v29 }
  0x89   :  { %v63_v38 = vsel %vm55_vm1, %v42_v32, %v45_v33  ;;  %v67_v39 = vsel %vm55_vm1, %v45_v33, %v48_v34  ;;  %v64_v40 = vsel %vm58_vm2, %v51_v35, 920167782  ;;  %v60_v3 = vsel %vm58_vm2, %v48_v34, 2102212464 }
  0x8a   :  { %v68_v41 = vsel %vm58_vm2, %v54_v36, 1326507024  ;;  %v65_v42 = vsel %vm57_vm3, %v48_v34, %v64_v40  ;;  %v59_v20 = vsel %vm55_vm1, %v39_v10, %v42_v32  ;;  %v61_v21 = vsel %vm57_vm3, %v45_v33, %v60_v3 }
  0x8b   :  { %v69_v43 = vsel %vm57_vm3, %v51_v35, %v68_v41  ;;  %v66_v44 = vsel %vm56_vm4, %v63_v38, %v65_v42  ;;  %v62_v13 = vsel %vm56_vm4, %v59_v20, %v61_v21 }
  0x8c   :  { %v70_v45 = vsel %vm56_vm4, %v67_v39, %v69_v43  ;;  %v96_v49 = vand.u32 65535, %v66_v44  ;;  %v97_v50 = vshrl.u32 %v66_v44, 16  ;;  %v116_v28 = vmul.u32 %v447_v37, %v62_v13 }
  0x8d   :  { %v74_v47 = vand.u32 65535, %v70_v45  ;;  %v75_v48 = vshrl.u32 %v70_v45, 16  ;;  %vm166_vm4 = vweird.f32 %v430_v4 }
  0x8e   :  { %v99_v53 = vmul.u32 %v97_v50, %v72_v46  ;;  %v100_v55 = vmul.u32 %v96_v49, %v73_v51  ;;  %v98_v58 = vmul.u32 %v96_v49, %v72_v46  ;;  %v101_v61 = vmul.u32 %v97_v50, %v73_v51 }
  0x8f   :  { %v77_v52 = vmul.u32 %v75_v48, %v72_v46  ;;  %v78_v54 = vmul.u32 %v74_v47, %v73_v51  ;;  %v76_v56 = vmul.u32 %v74_v47, %v72_v46  ;;  %v79_v60 = vmul.u32 %v75_v48, %v73_v51 }
  0x90   :  { %v102_v59 = vshll.u32 %v99_v53, 16  ;;  %v104_v63 = vshll.u32 %v100_v55, 16  ;;  %v103_v18 = vshrl.u32 %v99_v53, 16  ;;  %v105_v24 = vshrl.u32 %v100_v55, 16 }
  0x91   :  { %v80_v57 = vshll.u32 %v77_v52, 16  ;;  %v82_v62 = vshll.u32 %v78_v54, 16  ;;  %v81_v14 = vshrl.u32 %v77_v52, 16  ;;  %v83_v22 = vshrl.u32 %v78_v54, 16 }
  0x92   :  { %vm106_vm6 = vc.u32 %v98_v58, %v102_v59  ;;  %v108_v2 = vadd.s32 %v102_v59, %v98_v58 }
  0x93   :  { %vm84_vm5 = vc.u32 %v76_v56, %v80_v57  ;;  %v86_v0 = vadd.s32 %v80_v57, %v76_v56  ;;  %v107_v6 = vsel %vm106_vm6, 1, %v399_v1  ;;  %vm338_vm6 = vcmask 261120  }
  0x94   :  { %v85_v5 = vsel %vm84_vm5, 1, %v399_v1  ;;  %v109_v9 = vadd.s32 %v107_v6, %v101_v61  ;;  %vm110_vm8 = vc.u32 %v108_v2, %v104_v63  ;;  %v112_v26 = vadd.s32 %v108_v2, %v104_v63 }
  0x95   :  { %v87_v7 = vadd.s32 %v85_v5, %v79_v60  ;;  %vm88_vm7 = vc.u32 %v86_v0, %v82_v62  ;;  %v111_v12 = vsel %vm110_vm8, 1, %v399_v1  ;;  %vm336_vm5 = vcmask 130048  }
  0x96   :  { %v89_v11 = vsel %vm88_vm7, 1, %v399_v1  ;;  %v113_v19 = vadd.s32 %v111_v12, %v109_v9 }
  0x97   :  { %v91_v17 = vadd.s32 %v89_v11, %v87_v7 }
  0x98   :  { %v114_v25 = vadd.s32 %v113_v19, %v103_v18 }
  0x99   :  { %v92_v23 = vadd.s32 %v91_v17, %v81_v14 }
  0x9a   :  { %v115_v1 = vadd.s32 %v114_v25, %v105_v24 }
  0x9b   :  { %v93_v16 = vadd.s32 %v92_v23, %v83_v22 }
  0x9c   :  { %v119_v27 = vadd.s32 1, %v115_v1 }
  0x9d   :  { %vm118_vm9 = vc.u32 %v93_v16, %v112_v26  ;;  %v117_v40 = vadd.s32 %v112_v26, %v93_v16 }
  0x9e   :  { %v120_v29 = vsel %vm118_vm9, %v119_v27, %v115_v1 }
  0x9f   :  { %v121_v30 = vadd.s32 %v120_v29, %v116_v28 }
  0xa1   :  { %v122_v31 = vadd.s32 536870912, %v121_v30 }
  0xa3   :  { %v123_v32 = vshrl.u32 %v122_v31, 30 }
  0xa5   :  { %v124_v34 = vshll.u32 %v123_v32, 30  ;;  %v147_v53 = vsub.s32 4, %v123_v32 }
  0xa7   :  { %v125_v33 = vsub.s32 %v121_v30, %v124_v34  ;;  %v148_v58 = vsel %vm25_vm12, %v147_v53, %v123_v32 }
  0xa8   :  { %v150_v61 = vsel %vm24_vm13, 0, %v148_v58 }
  0xa9   :  { %vm126_vm10 = vcmp.lt.s32.totalorder %v125_v33, 0  ;;  %v127_v35 = vsub.s32 0, %v125_v33  ;;  %v321_v3 = vadd.s32 3, %v150_v61  ;;  %v167_v7 = vand.u32 3, %v150_v61 }
  0xab   :  { %v128_v36 = vsel %vm126_vm10, %v127_v35, %v125_v33  ;;  %v322_v10 = vand.u32 3, %v321_v3  ;;  %vm172_vm14 = vcmp.eq.s32.totalorder %v167_v7, 2  ;;  %vm168_vm15 = vcmp.lt.s32.totalorder %v167_v7, 2 }
  0xac   :  { %v129_v38 = vclz %v128_v36  ;;  %vm169_vm0 = vcmp.eq.s32.totalorder %v167_v7, 0 }
  0xad   :  { %vm324_vm1 = vcmp.eq.s32.totalorder %v322_v10, 0  ;;  %vm327_vm2 = vcmp.eq.s32.totalorder %v322_v10, 2  ;;  %vm323_vm3 = vcmp.lt.s32.totalorder %v322_v10, 2 }
  0xae   :  { %v357_v39 = vadd.s32 4294967294, %v129_v38 }
  0xb0   :  { %vm358_vm11 = vcmp.lt.s32.totalorder %v357_v39, 0 }
  0xb1   :  { %v132_v15 = vsel %vm358_vm11, 0, %v357_v39 }
  0xb2   :  { %v133_v41 = vsub.s32 32, %v132_v15  ;;  %v137_v42 = vsub.s32 4294967266, %v132_v15  ;;  %v134_v43 = vshll.u32 %v125_v33, %v132_v15 }
  0xb4   :  { %v135_v44 = vshrl.u32 %v117_v40, %v133_v41  ;;  %v138_v45 = vadd.s32 127, %v137_v42 }
  0xb6   :  { %v136_v37 = vor.u32 %v135_v44, %v134_v43  ;;  %v139_v46 = vshll.u32 %v138_v45, 23 }
  0xb8   :  { %v140_v47 = vor.u32 4788187, %v139_v46  ;;  %v143_v49 = vcvt.s32.f32 %v136_v37 }
  0xba   :  { %v141_v48 = vand.u32 2147483647, %v140_v47 }
  0xbc   :  { %v144_v50 = vmul.f32 %v143_v49, %v141_v48 }
  0xbe   :  { %v145_v51 = vxor.u32 2147483648, %v144_v50 }
  0xc0   :  { %v146_v52 = vsel %vm25_vm12, %v145_v51, %v144_v50 }
  0xc1   :  { %v149_v54 = vsel %vm24_vm13, %v430_v4, %v146_v52 }
  0xc2   :  { %v151_v55 = vmul.f32 %v149_v54, %v149_v54 }
  0xc4   :  { %v152_v56 = vmul.f32 -0.001358992, %v151_v55  ;;  %v159_v57 = vmul.f32 -0.00019511016, %v151_v55 }
  0xc6   :  { %v153_v59 = vadd.f32 0.041655596, %v152_v56  ;;  %v160_v60 = vadd.f32 0.008332121, %v159_v57 }
  0xc8   :  { %v154_v62 = vmul.f32 %v153_v59, %v151_v55  ;;  %v161_v63 = vmul.f32 %v160_v60, %v151_v55 }
  0xca   :  { %v155_v0 = vadd.f32 -0.4999988, %v154_v62  ;;  %v162_v2 = vadd.f32 -0.16666654, %v161_v63 }
  0xcc   :  { %v156_v5 = vmul.f32 %v155_v0, %v151_v55  ;;  %v163_v6 = vmul.f32 %v162_v2, %v151_v55 }
  0xce   :  { %v157_v8 = vadd.f32 1.0, %v156_v5  ;;  %v164_v9 = vadd.f32 1.0, %v163_v6 }
  0xd0   :  { %v165_v11 = vmul.f32 %v164_v9, %v149_v54  ;;  %v173_v12 = vxor.u32 2147483648, %v157_v8 }
  0xd2   :  { %v170_v14 = vxor.u32 2147483648, %v165_v11  ;;  %v174_v17 = vsel %vm172_vm14, %v173_v12, %v165_v11  ;;  %v329_v19 = vsel %vm327_vm2, %v173_v12, %v165_v11 }
  0xd4   :  { %v326_v18 = vsel %vm324_vm1, %v157_v8, %v170_v14  ;;  %v171_v20 = vsel %vm169_vm0, %v157_v8, %v170_v14 }
  0xd5   :  { %v330_v21 = vsel %vm323_vm3, %v326_v18, %v329_v19  ;;  %v175_v22 = vsel %vm168_vm15, %v171_v20, %v174_v17 }
  0xd6   :  { %v331_v23 = vsel %vm166_vm4, nan, %v330_v21  ;;  %v176_v24 = vsel %vm166_vm4, nan, %v175_v22 }
  0xd7   :  { %333 = vrot.lane.b32.xlu0 %v331_v23, %s406_s0 }
 0x149   :  { %v334_v25 = vpop.permute.xlu0 %333 }
 0x14a   :  { %v337_v13 = vsel %vm336_vm5, %v176_v24, %v334_v25 }
 0x14b   :  { %339 = vst.msk [vmem:[#allocation2] sm:$0xff] %vm338_vm6, %v337_v13 }
 0x14c   :  { %350 = dma.vmem_to_hbm [thread:$0]  %s346_s13, 128, %s348_s16, [#allocation3]  }
 0x14d   :  { %397 = dma.done.wait [#allocation3], 128  }
 0x14e   :  { %398 = vsyncadd [#allocation3], 4294967168 }
 0x14f   :  { %355 = vsyncpa [#allocation3], 1 }

</bundles_post_ra>
